<compile_context>
chip_gen: v6e
topology: v6e:2x2x1
jax: 0.10.0
libtpu: 0.0.40
codegen_flags: <defaults>
</compile_context>

<pallas_src>
import functools

import jax
import jax.numpy as jnp
from jax.experimental import pallas as pl
from jax.experimental.pallas import tpu as pltpu


def _ffn_kernel(x_ref, w1t_ref, b1_ref, w2t_ref, b2_ref, o_ref):
    # x_ref/o_ref: (tm, C) in I/O dtype; w1t: (C, Cp) bf16; b1: (1, Cp) f32;
    # w2t: (Cp, C) bf16; b2: (1, C) f32.
    x = x_ref[...]
    x_f32 = x.astype(jnp.float32)
    h = jnp.dot(x.astype(jnp.bfloat16), w1t_ref[...],
                preferred_element_type=jnp.float32)
    h = jnp.maximum(h + b1_ref[...], 0.0)                       # bias + ReLU in f32
    y = jnp.dot(h.astype(jnp.bfloat16), w2t_ref[...],
                preferred_element_type=jnp.float32)
    o_ref[...] = (y + b2_ref[...] + x_f32).astype(o_ref.dtype)  # bias + residual


def _vmem_budget_bytes():
    cap = 64 << 20                                   # conservative (v7x) fallback
    try:
        cap = int(getattr(pltpu.get_tpu_info(), "vmem_capacity_bytes", cap))
    except Exception:
        pass
    # Leave headroom for compiler-internal scratch: ~48 MiB on v7x, ~112 MiB on v5e/v6e.
    return max(cap - (16 << 20), 32 << 20)


def _footprint_bytes(tm, C, Cp, io_itemsize):
    io = 4 * tm * C * io_itemsize                    # double-buffered x + out tiles
    wts = 2 * C * Cp * 2                             # single-buffered bf16 W1^T + W2^T
    bias = 2 * 8 * max(Cp, 128) * 4                  # padded bias tiles
    inter = tm * Cp * 4 + tm * Cp * 2 + tm * C * 2   # h (f32) + bf16 cast copies
    return io + wts + bias + inter + (4 << 20)       # slack for compiler scratch


@functools.partial(jax.jit, static_argnames=("tm",))
def pointwise_ffn(inputs, w1, b1, w2, b2, *, tm=2048):
    """inputs: (N, L, C); w1, w2: (C_out, C_in) = Conv1d weight[..., 0]; b1, b2: (C,)."""
    N, L, C = inputs.shape
    R = N * L
    x2d = inputs.reshape(R, C)                       # activations stay UNPADDED

    Cp = ((C + 127) // 128) * 128                    # lane-dense hidden dim only
    pad_c = Cp - C

    w1t = w1.T.astype(jnp.bfloat16)                  # (C_in, C_out): x @ w1t == Conv1d(k=1)
    w2t = w2.T.astype(jnp.bfloat16)
    b1r = b1.reshape(1, C).astype(jnp.float32)
    b2r = b2.reshape(1, C).astype(jnp.float32)
    if pad_c:
        w1t = jnp.pad(w1t, ((0, 0), (0, pad_c)))     # pad hidden (output) lanes with 0
        w2t = jnp.pad(w2t, ((0, pad_c), (0, 0)))     # pad hidden (input) rows with 0
        b1r = jnp.pad(b1r, ((0, 0), (0, pad_c)))

    io_itemsize = jnp.dtype(inputs.dtype).itemsize

    # Row tile: large to amortise per-step overhead, multiple of 8; split so that
    # grid_rows >= 2 whenever possible (keeps both v7x TensorCores busy).
    tm = max(8, (int(tm) // 8) * 8)
    if R <= 8:
        tm_eff = R                                   # single block == full array dim
    else:
        tm_eff = min(tm, R)
        if tm_eff >= R:                              # would collapse grid to one step
            tm_eff = max(8, (pl.cdiv(R, 2) // 8) * 8)

    # Fit the per-generation VMEM budget by shrinking the tile, never by clamping.
    budget = _vmem_budget_bytes()
    while tm_eff > 8 and _footprint_bytes(tm_eff, C, Cp, io_itemsize) > budget:
        tm_eff = max(8, ((tm_eff // 2) // 8) * 8)

    grid_rows = pl.cdiv(R, tm_eff)
    vmem_limit = int(min(budget,
                         max(32 << 20, _footprint_bytes(tm_eff, C, Cp, io_itemsize))))

    flops = 4 * R * C * Cp                           # two matmuls, 2 flops/MAC
    bytes_accessed = 2 * R * C * io_itemsize + 2 * C * Cp * 2 + (Cp + C) * 4

    out2d = pl.pallas_call(
        _ffn_kernel,
        out_shape=jax.ShapeDtypeStruct((R, C), inputs.dtype),
        grid_spec=pltpu.PrefetchScalarGridSpec(
            num_scalar_prefetch=0,
            grid=(grid_rows,),
            in_specs=[
                pl.BlockSpec((tm_eff, C), lambda i: (i, 0)),        # x tile (unpadded)
                pl.BlockSpec((C, Cp), lambda i: (0, 0),
                             pipeline_mode=pl.Buffered(1)),         # W1^T, resident
                pl.BlockSpec((1, Cp), lambda i: (0, 0),
                             pipeline_mode=pl.Buffered(1)),         # b1
                pl.BlockSpec((Cp, C), lambda i: (0, 0),
                             pipeline_mode=pl.Buffered(1)),         # W2^T, resident
                pl.BlockSpec((1, C), lambda i: (0, 0),
                             pipeline_mode=pl.Buffered(1)),         # b2
            ],
            out_specs=pl.BlockSpec((tm_eff, C), lambda i: (i, 0)),  # unpadded store
        ),
        compiler_params=pltpu.CompilerParams(
            dimension_semantics=("parallel",),
            vmem_limit_bytes=vmem_limit,
        ),
        cost_estimate=pl.CostEstimate(
            flops=flops, transcendentals=0, bytes_accessed=bytes_accessed),
    )(x2d, w1t, b1r, w2t, b2r)

    return out2d.reshape(N, L, C)


def _reference(inputs, w1, b1, w2, b2):
    # Pure-JAX f32 reference matching the PyTorch forward (eval mode).
    h = jnp.maximum(jnp.einsum("nlc,oc->nlo", inputs, w1) + b1, 0.0)
    y = jnp.einsum("nlc,oc->nlo", h, w2) + b2
    return y + inputs


def _make_case(key, N, L, C):
    k_x, k_w1, k_b1, k_w2, k_b2 = jax.random.split(key, 5)
    scale = 1.0 / (C ** 0.5)
    x = jax.random.normal(k_x, (N, L, C), dtype=jnp.float32)
    # Conv1d(hidden, hidden, kernel_size=1) weights: (C_out, C_in) after squeezing k dim.
    w1 = jax.random.uniform(k_w1, (C, C), minval=-scale, maxval=scale, dtype=jnp.float32)
    b1 = jax.random.uniform(k_b1, (C,), minval=-scale, maxval=scale, dtype=jnp.float32)
    w2 = jax.random.uniform(k_w2, (C, C), minval=-scale, maxval=scale, dtype=jnp.float32)
    b2 = jax.random.uniform(k_b2, (C,), minval=-scale, maxval=scale, dtype=jnp.float32)
    return x, w1, b1, w2, b2


if __name__ == "__main__":
    key = jax.random.PRNGKey(0)
    k1, k2 = jax.random.split(key)

    # Case 1: module-sized shapes (batch=2, seq=8, hidden=32); unpadded C=32 last dim,
    # row tile split into 2 blocks (feeds both TCs on v7x, exercises multi-step grid).
    x, w1, b1, w2, b2 = _make_case(k1, 2, 8, 32)
    out = jax.block_until_ready(pointwise_ffn(x, w1, b1, w2, b2))
    ref = _reference(x, w1, b1, w2, b2)
    assert out.shape == x.shape
    assert jnp.allclose(out, ref, atol=5e-2, rtol=5e-2), (
        "case1 mismatch vs reference: max abs diff = %g"
        % float(jnp.max(jnp.abs(out - ref))))

    # Case 2: non-multiple-of-128 hidden dim, multi-step grid with a partial last
    # row block, explicit smaller row tile.
    x, w1, b1, w2, b2 = _make_case(k2, 3, 100, 48)
    out = jax.block_until_ready(pointwise_ffn(x, w1, b1, w2, b2, tm=128))
    ref = _reference(x, w1, b1, w2, b2)
    assert out.shape == x.shape
    assert jnp.allclose(out, ref, atol=5e-2, rtol=5e-2), (
        "case2 mismatch vs reference: max abs diff = %g"
        % float(jnp.max(jnp.abs(out - ref))))

    print("KERNEL_OK")
</pallas_src>

<mosaic_0001>
module attributes {stable_mosaic.version = 11 : i64} {
  func.func @_ffn_kernel(%arg0: i32, %arg1: memref<8x32xf32, #tpu.memory_space<vmem>>, %arg2: memref<32x128xbf16, #tpu.memory_space<vmem>>, %arg3: memref<1x128xf32, #tpu.memory_space<vmem>>, %arg4: memref<128x32xbf16, #tpu.memory_space<vmem>>, %arg5: memref<1x32xf32, #tpu.memory_space<vmem>>, %arg6: memref<8x32xf32, #tpu.memory_space<vmem>>) attributes {dimension_semantics = [#tpu.dimension_semantics<parallel>], iteration_bounds = array<i64: 2>, scalar_prefetch = 0 : i64, scratch_operands = 0 : i64, tpu.core_type = #tpu.core_type<tc>, window_params = [{transform_indices = @transform_0, window_bounds = array<i64: 8, 32>}, {pipeline_mode = #tpu.pipeline_mode<synchronous>, transform_indices = @transform_1, window_bounds = array<i64: 32, 128>}, {pipeline_mode = #tpu.pipeline_mode<synchronous>, transform_indices = @transform_2, window_bounds = array<i64: 1, 128>}, {pipeline_mode = #tpu.pipeline_mode<synchronous>, transform_indices = @transform_3, window_bounds = array<i64: 128, 32>}, {pipeline_mode = #tpu.pipeline_mode<synchronous>, transform_indices = @transform_4, window_bounds = array<i64: 1, 32>}, {transform_indices = @transform_5, window_bounds = array<i64: 8, 32>}]} {
    %c0 = arith.constant 0 : index
    %c0_0 = arith.constant 0 : index
    %0 = vector.load %arg1[%c0, %c0_0] : memref<8x32xf32, #tpu.memory_space<vmem>>, vector<8x32xf32>
    %1 = arith.truncf %0 : vector<8x32xf32> to vector<8x32xbf16>
    %c0_1 = arith.constant 0 : index
    %c0_2 = arith.constant 0 : index
    %2 = vector.load %arg2[%c0_1, %c0_2] : memref<32x128xbf16, #tpu.memory_space<vmem>>, vector<32x128xbf16>
    %cst = arith.constant dense<0.000000e+00> : vector<8x128xf32>
    %3 = tpu.matmul %1, %2, %cst {dimension_numbers = #tpu.dot_dimension_numbers<[1], [0], [0], [1], [0, 0, 1, 1], [], []>} : vector<8x32xbf16>, vector<32x128xbf16>, vector<8x128xf32> -> vector<8x128xf32>
    %c0_3 = arith.constant 0 : index
    %c0_4 = arith.constant 0 : index
    %4 = vector.load %arg3[%c0_3, %c0_4] : memref<1x128xf32, #tpu.memory_space<vmem>>, vector<1x128xf32>
    %5 = vector.broadcast %4 : vector<1x128xf32> to vector<8x128xf32>
    %6 = arith.addf %3, %5 : vector<8x128xf32>
    %cst_5 = arith.constant 0.000000e+00 : f32
    %7 = vector.broadcast %cst_5 : f32 to vector<8x128xf32>
    %8 = arith.maximumf %6, %7 : vector<8x128xf32>
    %9 = arith.truncf %8 : vector<8x128xf32> to vector<8x128xbf16>
    %c0_6 = arith.constant 0 : index
    %c0_7 = arith.constant 0 : index
    %10 = vector.load %arg4[%c0_6, %c0_7] : memref<128x32xbf16, #tpu.memory_space<vmem>>, vector<128x32xbf16>
    %cst_8 = arith.constant dense<0.000000e+00> : vector<8x32xf32>
    %11 = tpu.matmul %9, %10, %cst_8 {dimension_numbers = #tpu.dot_dimension_numbers<[1], [0], [0], [1], [0, 0, 1, 1], [], []>} : vector<8x128xbf16>, vector<128x32xbf16>, vector<8x32xf32> -> vector<8x32xf32>
    %c0_9 = arith.constant 0 : index
    %c0_10 = arith.constant 0 : index
    %12 = vector.load %arg5[%c0_9, %c0_10] : memref<1x32xf32, #tpu.memory_space<vmem>>, vector<1x32xf32>
    %13 = vector.broadcast %12 : vector<1x32xf32> to vector<8x32xf32>
    %14 = arith.addf %11, %13 : vector<8x32xf32>
    %15 = arith.addf %14, %0 : vector<8x32xf32>
    %c0_11 = arith.constant 0 : index
    %c0_12 = arith.constant 0 : index
    %16 = vector.load %arg6[%c0_11, %c0_12] : memref<8x32xf32, #tpu.memory_space<vmem>>, vector<8x32xf32>
    tpu.vector_store %arg6[%c0_11, %c0_12], %15 {strides = array<i32>} : memref<8x32xf32, #tpu.memory_space<vmem>>, vector<8x32xf32>,
    return
  }
  func.func @transform_0(%arg0: i32) -> (i32, i32) {
    %c0_i32 = arith.constant 0 : i32
    %c0_i32_0 = arith.constant 0 : i32
    return %arg0, %c0_i32 : i32, i32
  }
  func.func @transform_1(%arg0: i32) -> (i32, i32) {
    %c0_i32 = arith.constant 0 : i32
    %c0_i32_0 = arith.constant 0 : i32
    %c0_i32_1 = arith.constant 0 : i32
    return %c0_i32, %c0_i32_0 : i32, i32
  }
  func.func @transform_2(%arg0: i32) -> (i32, i32) {
    %c0_i32 = arith.constant 0 : i32
    %c0_i32_0 = arith.constant 0 : i32
    %c0_i32_1 = arith.constant 0 : i32
    return %c0_i32, %c0_i32_0 : i32, i32
  }
  func.func @transform_3(%arg0: i32) -> (i32, i32) {
    %c0_i32 = arith.constant 0 : i32
    %c0_i32_0 = arith.constant 0 : i32
    %c0_i32_1 = arith.constant 0 : i32
    return %c0_i32, %c0_i32_0 : i32, i32
  }
  func.func @transform_4(%arg0: i32) -> (i32, i32) {
    %c0_i32 = arith.constant 0 : i32
    %c0_i32_0 = arith.constant 0 : i32
    %c0_i32_1 = arith.constant 0 : i32
    return %c0_i32, %c0_i32_0 : i32, i32
  }
  func.func @transform_5(%arg0: i32) -> (i32, i32) {
    %c0_i32 = arith.constant 0 : i32
    %c0_i32_0 = arith.constant 0 : i32
    return %arg0, %c0_i32 : i32, i32
  }
}

</mosaic_0001>

<bundles_post_ra>
// kernel: pointwise_ffn.1
= control target key start
LH: loop header
LB: loop body
LE: loop exit
PB: predicated region body
PF: predicated region fallthrough
CT: control target
= control target key end

     0   :  { %10 = vsyncpa [#allocation3], 0  ;;  %s824_s0 = inlined_call_operand.vmem [shape: f32[16,32], index: 0, kind: input, shape index: {}]   ;;  %s825_s1 = inlined_call_operand.vmem [shape: bf16[32,128], index: 1, kind: input, shape index: {}]   ;;  %s826_s2 = inlined_call_operand.vmem [shape: f32[1,128], index: 2, kind: input, shape index: {}]   ;;  %s827_s3 = inlined_call_operand.vmem [shape: bf16[128,32], index: 3, kind: input, shape index: {}]   ;;  %s828_s4 = inlined_call_operand.vmem [shape: f32[1,32], index: 4, kind: input, shape index: {}]   ;;  %s829_s5 = inlined_call_operand.hbm [shape: f32[16,32], index: 5, kind: output, shape index: {}]  }
   0x1   :  { %12 = vsyncpa [#allocation3 + $0x1], 0  ;;  %s687_s18 = smov 0   ;;  %s689_s19 = smov 0  }
   0x2   :  { %s691_s20 = smov 0   ;;  %s693_s21 = smov 0  }
   0x3 LB: > { %s708_s22 = sadd.s32 4294967295, %s652_s21   ;;  %s478_s23 = sadd.s32 4294967294, %s652_s21   ;;  %s652_s21 = sphi %s693_s21, %s835_s21   ;;  %s648_s20 = sphi %s691_s20, %s834_s20   ;;  %s644_s19 = sphi %s689_s19, %s833_s19   ;;  %s640_s18 = sphi %s687_s18, %s832_s18  }
   0x4   : > { %s712_s24 = sadd.s32 1, %s652_s21   ;;  %s135_s25 = sadd.s32 1, %s648_s20 }
   0x5   : > { %s132_s26 = ssub.s32 %s652_s21, %s712_s24  ;;  %p145_p0 = scmp.ne.s32.totalorder %s648_s20, %s644_s19 }
   0x6   : > { %p133_p1 = scmp.eq.s32.totalorder %s132_s26, 0  ;;  %p146_p2 = scmp.eq.s32.totalorder %s708_s22, 1 }
   0x7   : > { %p151_p3 = scmp.ne.s32.totalorder %s644_s19, %s640_s18  ;;  %p152_p4 = scmp.eq.s32.totalorder %s478_s23, 1 }
   0x8   : > { %s723_s27 = scalar_select %p133_p1, %s648_s20, %s135_s25  }
   0x9   : > { %p725_p5 = por %p146_p2, %p145_p0  ;;  %p729_p6 = por %p152_p4, %p151_p3 }
   0xa   : > { %p481_p7 = scmp.ge.s32.totalorder %s652_s21, 1  ;;  %p189_p8 = scmp.lt.s32.totalorder %s652_s21, 3 }
   0xc   : > { %p190_p9 = pnand %p481_p7, %p189_p8 }
   0xd   : > { %p216_p10 = scmp.lt.s32.totalorder (!%p190_p9), %s708_s22, 1  ;;  %s213_s16 = sand.u32 (!%p190_p9), 1, %s644_s19  }
   0xe   : > { %193 = sbr.rel (%p190_p9) target bundleno = 438 (0x1b6), region = 40  ;;  %s498_s26 = sshll.u32 (!%p190_p9), %s708_s22, 7 }
   0xf   : > { %s782_s9 = scalar_lea.hbm (!%p190_p9), %s829_s5, %s498_s26 }
  0x13   : > { %v582_v0 = vld [vmem:[%s825_s1 + $0x8] sm:$0xff]   ;;  %v654_v1 = vmov 0.0   ;;  %v583_v2 = vld [vmem:[%s825_s1] sm:$0xff]   ;;  %vm655_vm0 = vmmov 0   ;;  %v584_v3 = vld [vmem:[%s827_s3 + $0x38] sm:$0xff]   ;;  %s217_s11 = scalar_select %p216_p10, %s708_s22, 1 }
  0x14   : > { %513 = vmatprep.subr.bf16.mxu0 %v654_v1  ;;  %521 = vmatprep.subr.bf16.mxu1 %v654_v1  ;;  %v585_v4 = vld [vmem:[%s827_s3 + $0x30] sm:$0xff]   ;;  %vm246_vm1 = vcmask 261120   ;;  %v586_v6 = vld [vmem:[%s827_s3 + $0x28] sm:$0xff]   ;;  %v587_v8 = vld [vmem:[%s827_s3 + $0x20] sm:$0xff]   ;;  %s406_s22 = scalar_lea.sflag [#allocation3], %s213_s16 }
  0x15   : > { %514 = vmatpush3.bf16.msra.mxu0 %v582_v0  ;;  %517 = vmatprep.mubr.msk.bf16.mxu0 %vm655_vm0, %v654_v1  ;;  %s483_s14 = sshll.u32 %s217_s11, 3  ;;  %v588_v9 = vld [vmem:[%s827_s3 + $0x18] sm:$0xff]   ;;  %v589_v10 = vld [vmem:[%s827_s3 + $0x10] sm:$0xff]   ;;  %v590_v11 = vld [vmem:[%s827_s3 + $0x8] sm:$0xff]   ;;  %s656_s11 = smov [#allocation2]  }
  0x16   : > { %515 = vmatprep.subr.bf16.mxu0 %v654_v1  ;;  %537 = vmatprep.mubr.msk.bf16.mxu1 %vm655_vm0, %v654_v1  ;;  %s219_s17 = scalar_lea.vmem %s824_s0, %s483_s14  ;;  %v591_v12 = vld [vmem:[%s827_s3] sm:$0xff]   ;;  %s596_s12 = sshll.u32 %s656_s11, 4  ;;  %s597_s12 = int_to_ptr.vmem [resolvable:$false] %s596_s12 }
  0x17   : > { %522 = vmatpush3.bf16.msra.mxu1 %v584_v3  ;;  %v221_v5 = vld [vmem:[%s219_s17] sm:$0xff]  ;;  %s482_s17 = sshll.u32 %s213_s16, 3  ;;  %s598_s13 = scalar_lea.vmem %s597_s12, 256 }
  0x18   : > { %523 = vmatprep.subr.bf16.mxu1 %v654_v1  ;;  %v222_v7 = vpack.c.bf16 %v221_v5, %v221_v5  ;;  %v484_v13 = vld [vmem:[%s826_s2] ss:$0 sm:$0xff]  ;;  %s215_s30 = scalar_lea.vmem [#allocation2], %s482_s17 }
  0x19   : > { %516 = vmatpush3.bf16.msra.mxu0 %v583_v2  ;;  %v488_v21 = vld [vmem:[%s828_s4] ss:$0 sm:$0xff]  ;;  %s419_s6 = sshll.u32 %s215_s30, 4  ;;  %s784_s6 = int_to_ptr.vmem [resolvable:$true] %s419_s6 }
  0x1a   : > { %s592_s10 = scalar_lea.vmem %s784_s6, 128  ;;  %p599_p0 = scmp.lt.s32.totalorder %s784_s6, %s597_s12 }
  0x1b   : > { %524 = vmatpush3.bf16.msra.mxu1 %v585_v4  ;;  %p593_p11 = scmp.ne.s32.totalorder %s784_s6, %s592_s10  ;;  %p600_p1 = scmp.lt.s32.totalorder %s598_s13, %s592_s10 }
  0x1c   : > { %525 = vmatprep.subr.bf16.mxu1 %v654_v1  ;;  %518 = vmatmul.mubr.msk.bf16.vlgmr.msra.gmra.mxu0 %vm246_vm1, %v222_v7 }
  0x1d   : > { %p594_p12 = pnand %p593_p11, %p725_p5  ;;  %p601_p2 = por %p600_p1, %p599_p0 }
  0x1f   : > { %526 = vmatpush3.bf16.msra.mxu1 %v586_v6  ;;  %p595_p13 = pneg %p594_p12 }
  0x20   : > { %527 = vmatprep.subr.bf16.mxu1 %v654_v1 }
  0x21   : > { %p602_p3 = pnand %p601_p2, %p595_p13 }
  0x23   : > { %528 = vmatpush3.bf16.msra.mxu1 %v587_v8 }
  0x24   : > { %529 = vmatprep.subr.bf16.mxu1 %v654_v1 }
  0x27   : > { %530 = vmatpush3.bf16.msra.mxu1 %v588_v9 }
  0x28   : > { %531 = vmatprep.subr.bf16.mxu1 %v654_v1 }
  0x2b   : > { %532 = vmatpush3.bf16.msra.mxu1 %v589_v10 }
  0x2c   : > { %533 = vmatprep.subr.bf16.mxu1 %v654_v1 }
  0x2f   : > { %534 = vmatpush3.bf16.msra.mxu1 %v590_v11 }
  0x30   : > { %535 = vmatprep.subr.bf16.mxu1 %v654_v1 }
  0x33   : > { %536 = vmatpush3.bf16.msra.mxu1 %v591_v12 }
  0xdc   : > { %v284_v14 = vpop.f32.mrf.mxu0 }
  0xdd   : > { %v285_v15 = vadd.f32 %v484_v13, %v284_v14 }
  0xde   : > { %v519_v16 = vpop.f32.mrf.mxu0 }
  0xdf   : > { %v290_v17 = vmax.f32 %v285_v15, 0.0 }
  0xe0   : > { %v287_v18 = vpop.f32.mrf.mxu0 }
  0xe1   : > { %v291_v19 = vpack.c.bf16 %v290_v17, %v290_v17 }
  0xe2   : > { %v520_v20 = vpop.f32.mrf.mxu0 }
  0xe3   : > { %538 = vmatmul.mubr.bf16.vlgmr.msra.gmra.mxu1 %v291_v19 }
 0x1a3   : > { %v397_v22 = vpop.f32.mrf.mxu1 }
 0x1a4   : > { %v398_v23 = vadd.f32 %v488_v21, %v397_v22 }
 0x1a5   : > { %v539_v24 = vpop.f32.mrf.mxu1 }
 0x1a6   : > { %v403_v25 = vadd.f32 %v398_v23, %v221_v5 }
 0x1a7   : > { %v400_v26 = vpop.f32.mrf.mxu1 }
 0x1a8   : > { %404 = vst.msk [vmem:[%s215_s30] sm:$0xff] %vm246_vm1, %v403_v25 }
 0x1a9   : > { %v540_v27 = vpop.f32.mrf.mxu1 }
 0x1aa   : > { %605 = shalt.err (!%p602_p3)
}
 0x1ab   : > { %s606_s14 = scalar_lea.hbm %s782_s9, 128  ;;  %s610_s17 = scalar_lea.hbm %s829_s5, 256 }
 0x1ac   : > { %p607_p4 = scmp.ne.s32.totalorder %s782_s9, %s606_s14  ;;  %p611_p9 = scmp.lt.s32.totalorder %s782_s9, %s829_s5 }
 0x1ad   : > { %p612_p10 = scmp.lt.s32.totalorder %s610_s17, %s606_s14 }
 0x1ae   : > { %p608_p7 = pnand %p607_p4, %p725_p5 }
 0x1af   : > { %p613_p11 = por %p612_p10, %p611_p9 }
 0x1b0   : > { %p609_p8 = pneg %p608_p7 }
 0x1b2   : > { %p614_p12 = pnand %p613_p11, %p609_p8 }
 0x1b4   : > { %617 = shalt.err (!%p614_p12)
}
 0x1b5   : > { %541 = dma.vmem_to_hbm [thread:$0]  (%p725_p5), %s784_s6, 128, %s782_s9, %s406_s22  }
 0x1b6 PF: > { %p547_p13 = scmp.ge.s32.totalorder %s652_s21, 2  ;;  %s431_s26 = sand.u32 1, %s640_s18  }
 0x1b7   : > { %s432_s30 = scalar_lea.sflag [#allocation3], %s431_s26 }
 0x1b8   : > { %p544_p0 = pnand %p547_p13, %p729_p6 }
 0x1ba   : > { %p545_p1 = pneg %p544_p0 }
 0x1bc   : > { %635 = dma.done.wait (%p545_p1), %s432_s30, 128  }
 0x1bd   : > { %637 = vsyncadd (%p545_p1), %s432_s30, 4294967168  ;;  %p15_p2 = scmp.ge.s32.totalorder %s712_s24, 4   ;;  %s832_s18 = smov %s644_s19 }
 0x1be   : > { %s833_s19 = smov %s648_s20  ;;  %s834_s20 = smov %s723_s27 }
 0x1bf   : > { %s835_s21 = smov %s712_s24  ;;  %17 = sbr.rel (!%p15_p2) target bundleno = 3 (0x3), region = 75 }
 0x1c4   :  { %437 = vsyncpa [#allocation3], 1 }
 0x1c5   :  { %439 = vsyncpa [#allocation3 + $0x1], 1 }

</bundles_post_ra>
